<compile_context>
chip_gen: v7x
topology: tpu7x:2x2x1
jax: 0.10.0
libtpu: 0.0.40
codegen_flags: <defaults>
</compile_context>

<pallas_src>
from functools import partial

import numpy as np
import jax
import jax.numpy as jnp
from jax.experimental import pallas as pl
from jax.experimental.pallas import tpu as pltpu


# ----------------------------------------------------------------------------
# Sparse-format helpers (mirror to_sparse_format_conv2d / from_sparse_format).
# ----------------------------------------------------------------------------
def to_sparse_format_conv2d(dense_weight_np):
    flat = np.asarray(dense_weight_np, dtype=np.float32).reshape(-1)
    w_idx = np.nonzero(flat)[0].astype(np.int32)
    w_val = flat[w_idx]
    return jnp.asarray(w_val), jnp.asarray(w_idx)


def from_sparse_format_conv2d(w_val, w_idx, shape):
    numel = int(np.prod(shape))
    flat = jnp.zeros((numel,), dtype=w_val.dtype).at[w_idx].set(w_val)
    return flat.reshape(shape)


# ----------------------------------------------------------------------------
# Tiling / VMEM budgets.  Conservative enough for v7x (64 MiB physical VMEM,
# double-buffered blocks), still large enough to approach the HBM roofline on
# v5e / v6e (128 MiB VMEM).
# ----------------------------------------------------------------------------
_W_RESIDENT_BYTES = 8 * 1024 * 1024    # 2x-buffered folded-weight residency cap
_VMEM_TILE_BUDGET = 28 * 1024 * 1024   # total 2x-buffered block budget
_VMEM_LIMIT_BYTES = 48 * 1024 * 1024   # scoped VMEM limit handed to Mosaic
_TM_HARD_CAP = 2048                    # rows of output per tile (upper bound)
_TN_CAP = 512                          # only used if weight can't be resident
_TK_CAP = 2048                         # only used if weight can't be resident


def _round_up(x, m):
    return ((x + m - 1) // m) * m


def _cdiv(a, b):
    return -(-a // b)


# ----------------------------------------------------------------------------
# Pallas kernel: tiled matmul + bias, f32 accumulation directly in o_ref.
#   grid = (M tiles, OC tiles, K tiles)  -- reduction axis last.
# With a VMEM-resident weight the last two axes are size 1 and only the
# kk==0 branch ever executes (single store, no accumulator RMW).
# ----------------------------------------------------------------------------
def _matmul_bias_kernel(p_ref, w_ref, b_ref, o_ref):
    acc = jnp.dot(p_ref[...], w_ref[...], preferred_element_type=jnp.float32)

    @pl.when(pl.program_id(2) == 0)
    def _():
        o_ref[...] = acc + b_ref[...]

    @pl.when(pl.program_id(2) > 0)
    def _():
        o_ref[...] += acc


# ----------------------------------------------------------------------------
# Forward pass (activation path only; weight is prepacked in __init__)
# ----------------------------------------------------------------------------
@partial(jax.jit,
         static_argnames=("oc", "k", "padding", "stride", "kept_positions",
                          "kdim", "k_pad", "oc_pad", "tk", "tn"))
def _sparse_conv2d_forward(x_nchw, w_b, bias_p, *, oc, k, padding, stride,
                           kept_positions, kdim, k_pad, oc_pad, tk, tn):
    """x_nchw: (N, IC, H, W) f32; w_b: (k_pad, oc_pad) bf16; bias_p: (1, oc_pad) f32."""
    N, IC, H, W = x_nchw.shape
    s, p = stride, padding
    OH = (H + 2 * p - k) // s + 1
    OW = (W + 2 * p - k) // s + 1
    M = N * OH * OW

    # ---- glue: bf16 first, then NCHW -> NHWC, spatial pad, folded im2col ----
    x_nhwc = jnp.transpose(x_nchw.astype(jnp.bfloat16), (0, 2, 3, 1))
    x_pad = jnp.pad(x_nhwc, ((0, 0), (p, p), (p, p), (0, 0)))

    cols = []
    for r in kept_positions:                    # static: pruned (kh, kw) set
        kh, kw = r // k, r % k
        sl = x_pad[:, kh:kh + s * OH:s, kw:kw + s * OW:s, :]   # (N,OH,OW,IC)
        cols.append(sl.reshape(M, IC))
    patches = jnp.concatenate(cols, axis=1)                    # (M, kdim) bf16

    # ---- M tiling: sublane-aligned, cdiv-balanced, VMEM-budgeted ------------
    weight_vmem = 2 * tk * tn * 2                       # double-buffered bf16
    per_row = 2 * tk * 2 + 2 * tn * 4                   # patches bf16 + out f32
    tm_max = (_VMEM_TILE_BUDGET - weight_vmem) // per_row
    tm_max = max(8, min(_TM_HARD_CAP, (tm_max // 8) * 8))
    n_mt = _cdiv(_round_up(M, 8), tm_max)
    if n_mt == 1 and M >= 1024:
        n_mt = 2                                        # keep both v7x TCs busy
    tm = _round_up(_cdiv(M, n_mt), 8)
    m_pad = tm * n_mt

    patches_b = jnp.pad(patches, ((0, m_pad - M), (0, k_pad - kdim)))

    grid = (n_mt, oc_pad // tn, k_pad // tk)
    n_j, n_k = grid[1], grid[2]
    w_reads = 1 if (n_j == 1 and n_k == 1) else n_mt    # weight re-streams only
                                                        # if its block index moves
    cost = pl.CostEstimate(
        flops=2 * m_pad * oc_pad * k_pad,
        transcendentals=0,
        bytes_accessed=(m_pad * k_pad * 2 * n_j
                        + k_pad * oc_pad * 2 * w_reads
                        + oc_pad * 4
                        + m_pad * oc_pad * 4),
    )

    out_pad = pl.pallas_call(
        _matmul_bias_kernel,
        out_shape=jax.ShapeDtypeStruct((m_pad, oc_pad), jnp.float32),
        grid_spec=pltpu.PrefetchScalarGridSpec(
            num_scalar_prefetch=0,
            grid=grid,
            in_specs=[
                pl.BlockSpec((tm, tk), lambda i, j, kk: (i, kk)),
                pl.BlockSpec((tk, tn), lambda i, j, kk: (kk, j)),
                pl.BlockSpec((1, tn), lambda i, j, kk: (0, j)),
            ],
            out_specs=pl.BlockSpec((tm, tn), lambda i, j, kk: (i, j)),
        ),
        compiler_params=pltpu.CompilerParams(
            dimension_semantics=("parallel", "parallel", "arbitrary"),
            vmem_limit_bytes=_VMEM_LIMIT_BYTES,
        ),
        cost_estimate=cost,
    )(patches_b, w_b, bias_p)

    # ---- glue: strip padding, (M, OC) -> NCHW (module returns NCHW) ---------
    # TODO(synk): if the consumer accepts NHWC, return the reshape directly and
    # skip this whole-output transpose (one fewer HBM read+write pass).
    out = out_pad[:M, :oc].reshape(N, OH, OW, oc)
    return jnp.transpose(out, (0, 3, 1, 2))


# ----------------------------------------------------------------------------
# Module-equivalent wrapper: all weight-side prep happens once here.
# ----------------------------------------------------------------------------
class SparseConv2dPallas:
    def __init__(self, dense_weight_np, bias=None, padding=0, stride=1,
                 vectorizing_over_on=False):
        dense_weight_np = np.asarray(dense_weight_np, dtype=np.float32)
        self.OC, self.IC, self.K, _ = dense_weight_np.shape
        self.padding = int(padding)
        self.stride = int(stride)
        # codegen hint in the original module; no effect on forward math here
        self.vectorizing_over_on = vectorizing_over_on

        # sparse storage, exactly like the torch module
        self.weight, self.W_idx = to_sparse_format_conv2d(dense_weight_np)
        self.bias = None if bias is None else jnp.asarray(bias,
                                                          dtype=jnp.float32)

        # structural sparsity: kernel-window positions (kh,kw) with >=1 nonzero
        idx_np = np.asarray(self.W_idx)
        kk = self.K * self.K
        if idx_np.size:
            self._kept_positions = tuple(int(r) for r in np.unique(idx_np % kk))
        else:
            self._kept_positions = tuple()
        self._kdim = len(self._kept_positions) * self.IC

        if self._kdim == 0:
            self._w_b = None
            self._bias_p = None
            return

        # ---- static tile choices for the weight side ------------------------
        k_pad128 = _round_up(self._kdim, 128)       # lane dim of patches block
        oc_pad128 = _round_up(self.OC, 128)         # lane dim of weight/out block
        if 2 * k_pad128 * oc_pad128 * 2 <= _W_RESIDENT_BYTES:
            # weight fully VMEM-resident: fetched from HBM exactly once,
            # no OC / reduction grid axes, no accumulator RMW traffic.
            self._tk, self._tn = k_pad128, oc_pad128
            self._k_pad, self._oc_pad = k_pad128, oc_pad128
        else:
            self._tk = min(k_pad128, _TK_CAP)
            self._tn = min(oc_pad128, _TN_CAP)
            self._k_pad = _round_up(k_pad128, self._tk)
            self._oc_pad = _round_up(oc_pad128, self._tn)

        # ---- fold + pad + bf16-cast the weight ONCE -------------------------
        # (OC, IC, K, K) -> (K, K, IC, OC) -> (K*K, IC, OC) -> keep -> (kdim, OC)
        w_kio = dense_weight_np.transpose(2, 3, 1, 0).reshape(kk, self.IC, self.OC)
        w_mat = np.concatenate([w_kio[r] for r in self._kept_positions], axis=0)
        w_pad = np.zeros((self._k_pad, self._oc_pad), np.float32)
        w_pad[:self._kdim, :self.OC] = w_mat
        self._w_b = jnp.asarray(w_pad, dtype=jnp.bfloat16)

        b_np = (np.zeros((self.OC,), np.float32) if bias is None
                else np.asarray(bias, dtype=np.float32))
        b_pad = np.zeros((1, self._oc_pad), np.float32)
        b_pad[0, :self.OC] = b_np
        self._bias_p = jnp.asarray(b_pad)

    def __call__(self, x_nchw):
        N, IC, H, W = x_nchw.shape
        s, p, k = self.stride, self.padding, self.K
        OH = (H + 2 * p - k) // s + 1
        OW = (W + 2 * p - k) // s + 1

        if self._kdim == 0:       # fully-zero weight: output is just the bias
            b = (self.bias if self.bias is not None
                 else jnp.zeros((self.OC,), dtype=jnp.float32))
            return jnp.broadcast_to(
                b.reshape(1, self.OC, 1, 1).astype(x_nchw.dtype),
                (N, self.OC, OH, OW))

        return _sparse_conv2d_forward(
            x_nchw, self._w_b, self._bias_p,
            oc=self.OC, k=self.K, padding=self.padding, stride=self.stride,
            kept_positions=self._kept_positions,
            kdim=self._kdim, k_pad=self._k_pad, oc_pad=self._oc_pad,
            tk=self._tk, tn=self._tn,
        )


if __name__ == "__main__":
    key = jax.random.PRNGKey(0)
    k_x, k_w, k_m, k_b = jax.random.split(key, 4)

    # Small shapes consistent with a conv: N=2, IC=4, H=W=16, OC=8, K=3.
    N, IC, H, W = 2, 4, 16, 16
    OC, K = 8, 3
    padding, stride = 1, 2

    x = jax.random.normal(k_x, (N, IC, H, W), dtype=jnp.float32)

    # Deterministic sparse weight: ~75% of entries zeroed.
    w_full = jax.random.normal(k_w, (OC, IC, K, K), dtype=jnp.float32)
    keep_mask = (jax.random.uniform(k_m, (OC, IC, K, K)) < 0.25).astype(jnp.float32)
    dense_weight = np.asarray(w_full * keep_mask)
    bias = jax.random.normal(k_b, (OC,), dtype=jnp.float32)

    module = SparseConv2dPallas(dense_weight, bias=bias,
                                padding=padding, stride=stride)
    out = jax.block_until_ready(module(x))

    # --- Check 1 (tight): same bf16-quantized operands the MXU sees, f32
    #     accumulation -> validates the kernel math / tiling / layout exactly.
    xq = x.astype(jnp.bfloat16).astype(jnp.float32)
    wq = jnp.asarray(dense_weight).astype(jnp.bfloat16).astype(jnp.float32)
    ref_q = jax.lax.conv_general_dilated(
        xq, wq,
        window_strides=(stride, stride),
        padding=((padding, padding), (padding, padding)),
        dimension_numbers=("NCHW", "OIHW", "NCHW"),
        precision=jax.lax.Precision.HIGHEST,
    ) + bias.reshape(1, OC, 1, 1)
    assert out.shape == ref_q.shape, (out.shape, ref_q.shape)
    np.testing.assert_allclose(np.asarray(out), np.asarray(ref_q),
                               rtol=1e-4, atol=1e-4)

    # --- Check 2 (coarse sanity bound): full-precision f32 reference; the
    #     difference is purely the deliberate bf16 input quantization.
    ref = jax.lax.conv_general_dilated(
        x, jnp.asarray(dense_weight),
        window_strides=(stride, stride),
        padding=((padding, padding), (padding, padding)),
        dimension_numbers=("NCHW", "OIHW", "NCHW"),
        precision=jax.lax.Precision.HIGHEST,
    ) + bias.reshape(1, OC, 1, 1)
    np.testing.assert_allclose(np.asarray(out), np.asarray(ref),
                               rtol=0.1, atol=0.5)

    print("KERNEL_OK")
</pallas_src>

<mosaic_0001>
module attributes {stable_mosaic.version = 11 : i64} {
  func.func @_matmul_bias_kernel(%arg0: i32, %arg1: i32, %arg2: i32, %arg3: memref<128x128xbf16, #tpu.memory_space<vmem>>, %arg4: memref<128x128xbf16, #tpu.memory_space<vmem>>, %arg5: memref<1x128xf32, #tpu.memory_space<vmem>>, %arg6: memref<128x128xf32, #tpu.memory_space<vmem>>) attributes {dimension_semantics = [#tpu.dimension_semantics<parallel>, #tpu.dimension_semantics<parallel>, #tpu.dimension_semantics<arbitrary>], iteration_bounds = array<i64: 1, 1, 1>, scalar_prefetch = 0 : i64, scratch_operands = 0 : i64, tpu.core_type = #tpu.core_type<tc>, window_params = [{transform_indices = @transform_0, window_bounds = array<i64: 128, 128>}, {transform_indices = @transform_1, window_bounds = array<i64: 128, 128>}, {transform_indices = @transform_2, window_bounds = array<i64: 1, 128>}, {transform_indices = @transform_3, window_bounds = array<i64: 128, 128>}]} {
    %c0 = arith.constant 0 : index
    %c0_0 = arith.constant 0 : index
    %0 = vector.load %arg3[%c0, %c0_0] : memref<128x128xbf16, #tpu.memory_space<vmem>>, vector<128x128xbf16>
    %c0_1 = arith.constant 0 : index
    %c0_2 = arith.constant 0 : index
    %1 = vector.load %arg4[%c0_1, %c0_2] : memref<128x128xbf16, #tpu.memory_space<vmem>>, vector<128x128xbf16>
    %cst = arith.constant dense<0.000000e+00> : vector<128x128xf32>
    %2 = tpu.matmul %0, %1, %cst {dimension_numbers = #tpu.dot_dimension_numbers<[1], [0], [0], [1], [0, 0, 1, 1], [], []>} : vector<128x128xbf16>, vector<128x128xbf16>, vector<128x128xf32> -> vector<128x128xf32>
    %c0_i32 = arith.constant 0 : i32
    %3 = arith.cmpi eq, %arg2, %c0_i32 : i32
    %4 = arith.extui %3 : i1 to i32
    %c0_i32_3 = arith.constant 0 : i32
    %5 = arith.cmpi ne, %4, %c0_i32_3 : i32
    scf.if %5 {
      %c0_6 = arith.constant 0 : index
      %c0_7 = arith.constant 0 : index
      %9 = vector.load %arg5[%c0_6, %c0_7] : memref<1x128xf32, #tpu.memory_space<vmem>>, vector<1x128xf32>
      %10 = vector.broadcast %9 : vector<1x128xf32> to vector<128x128xf32>
      %11 = arith.addf %2, %10 : vector<128x128xf32>
      %c0_8 = arith.constant 0 : index
      %c0_9 = arith.constant 0 : index
      %12 = vector.load %arg6[%c0_8, %c0_9] : memref<128x128xf32, #tpu.memory_space<vmem>>, vector<128x128xf32>
      tpu.vector_store %arg6[%c0_8, %c0_9], %11 {strides = array<i32>} : memref<128x128xf32, #tpu.memory_space<vmem>>, vector<128x128xf32>,
    } else {
    }
    %c0_i32_4 = arith.constant 0 : i32
    %6 = arith.cmpi sgt, %arg2, %c0_i32_4 : i32
    %7 = arith.extui %6 : i1 to i32
    %c0_i32_5 = arith.constant 0 : i32
    %8 = arith.cmpi ne, %7, %c0_i32_5 : i32
    scf.if %8 {
      %c0_6 = arith.constant 0 : index
      %c0_7 = arith.constant 0 : index
      %9 = vector.load %arg6[%c0_6, %c0_7] : memref<128x128xf32, #tpu.memory_space<vmem>>, vector<128x128xf32>
      %10 = arith.addf %9, %2 : vector<128x128xf32>
      %c0_8 = arith.constant 0 : index
      %c0_9 = arith.constant 0 : index
      %11 = vector.load %arg6[%c0_8, %c0_9] : memref<128x128xf32, #tpu.memory_space<vmem>>, vector<128x128xf32>
      tpu.vector_store %arg6[%c0_8, %c0_9], %10 {strides = array<i32>} : memref<128x128xf32, #tpu.memory_space<vmem>>, vector<128x128xf32>,
    } else {
    }
    return
  }
  func.func @transform_0(%arg0: i32, %arg1: i32, %arg2: i32) -> (i32, i32) {
    %c0_i32 = arith.constant 0 : i32
    return %arg0, %arg2 : i32, i32
  }
  func.func @transform_1(%arg0: i32, %arg1: i32, %arg2: i32) -> (i32, i32) {
    %c0_i32 = arith.constant 0 : i32
    return %arg2, %arg1 : i32, i32
  }
  func.func @transform_2(%arg0: i32, %arg1: i32, %arg2: i32) -> (i32, i32) {
    %c0_i32 = arith.constant 0 : i32
    %c0_i32_0 = arith.constant 0 : i32
    return %c0_i32, %arg1 : i32, i32
  }
  func.func @transform_3(%arg0: i32, %arg1: i32, %arg2: i32) -> (i32, i32) {
    %c0_i32 = arith.constant 0 : i32
    return %arg0, %arg1 : i32, i32
  }
}

</mosaic_0001>

<bundles_post_ra>
// kernel: _sparse_conv2d_forward.1
= control target key start
LH: loop header
LB: loop body
LE: loop exit
PB: predicated region body
PF: predicated region fallthrough
CT: control target
= control target key end

     0   :  { %s555_s1 = inlined_call_operand.vmem [shape: bf16[128,128], index: 1, kind: input, shape index: {}]   ;;  %s556_s0 = inlined_call_operand.vmem [shape: bf16[128,128], index: 0, kind: input, shape index: {}]   ;;  %s557_s2 = inlined_call_operand.vmem [shape: f32[1,128], index: 2, kind: input, shape index: {}]   ;;  %s558_s3 = inlined_call_operand.vmem [shape: f32[128,128], index: 3, kind: output, shape index: {}]  }
   0x1   :  { %v420_v0 = vld [vmem:[%s555_s1] sm:$0xff]   ;;  %v421_v1 = vld [vmem:[%s555_s1 + $0x8] sm:$0xff]   ;;  %v422_v2 = vld [vmem:[%s555_s1 + $0x10] sm:$0xff]  }
   0x2   :  { %372 = vmatprep.subr.bf16.mxu0 %v420_v0  ;;  %404 = vmatprep.subr.bf16.mxu1 %v420_v0  ;;  %v423_v3 = vld [vmem:[%s555_s1 + $0x18] sm:$0xff]   ;;  %v428_v4 = vld [vmem:[%s556_s0] sm:$0xff]   ;;  %v425_v7 = vld [vmem:[%s555_s1 + $0x28] sm:$0xff]  }
   0x3   :  { %373 = vmatpush3.bf16.msra.mxu0 %v420_v0  ;;  %412 = vmatpush3.bf16.msra.mxu1 %v420_v0  ;;  %v429_v5 = vld [vmem:[%s556_s0 + $0x20] sm:$0xff]   ;;  %v426_v8 = vld [vmem:[%s555_s1 + $0x30] sm:$0xff]   ;;  %v427_v9 = vld [vmem:[%s555_s1 + $0x38] sm:$0xff]  }
   0x4   :  { %374 = vmatprep.subr.bf16.mxu0 %v421_v1  ;;  %405 = vmatprep.subr.bf16.mxu1 %v421_v1  ;;  %v424_v6 = vld [vmem:[%s555_s1 + $0x20] sm:$0xff]   ;;  %v430_v10 = vld [vmem:[%s556_s0 + $0x8] sm:$0xff]   ;;  %v432_v12 = vld [vmem:[%s556_s0 + $0x10] sm:$0xff]  }
   0x5   :  { %388 = vmatprep.mubr.bf16.mxu0 %v428_v4  ;;  %396 = vmatprep.mubr.bf16.mxu1 %v429_v5  ;;  %v431_v11 = vld [vmem:[%s556_s0 + $0x28] sm:$0xff]   ;;  %v433_v13 = vld [vmem:[%s556_s0 + $0x30] sm:$0xff]   ;;  %v434_v14 = vld [vmem:[%s556_s0 + $0x18] sm:$0xff]  }
   0x6   :  { %v435_v15 = vld [vmem:[%s556_s0 + $0x38] sm:$0xff]   ;;  %v355_v16 = vld [vmem:[%s557_s2] ss:$0 sm:$0xff] }
   0x7   :  { %375 = vmatpush3.bf16.msra.mxu0 %v421_v1  ;;  %413 = vmatpush3.bf16.msra.mxu1 %v421_v1 }
   0x8   :  { %376 = vmatprep.subr.bf16.mxu0 %v422_v2  ;;  %406 = vmatprep.subr.bf16.mxu1 %v422_v2 }
   0xb   :  { %377 = vmatpush3.bf16.msra.mxu0 %v422_v2  ;;  %414 = vmatpush3.bf16.msra.mxu1 %v422_v2 }
   0xc   :  { %378 = vmatprep.subr.bf16.mxu0 %v423_v3  ;;  %407 = vmatprep.subr.bf16.mxu1 %v423_v3 }
   0xf   :  { %379 = vmatpush3.bf16.msra.mxu0 %v423_v3  ;;  %415 = vmatpush3.bf16.msra.mxu1 %v423_v3 }
  0x10   :  { %380 = vmatprep.subr.bf16.mxu0 %v424_v6  ;;  %408 = vmatprep.subr.bf16.mxu1 %v424_v6 }
  0x13   :  { %381 = vmatpush3.bf16.msra.mxu0 %v424_v6  ;;  %416 = vmatpush3.bf16.msra.mxu1 %v424_v6 }
  0x14   :  { %382 = vmatprep.subr.bf16.mxu0 %v425_v7  ;;  %409 = vmatprep.subr.bf16.mxu1 %v425_v7 }
  0x17   :  { %383 = vmatpush3.bf16.msra.mxu0 %v425_v7  ;;  %417 = vmatpush3.bf16.msra.mxu1 %v425_v7 }
  0x18   :  { %384 = vmatprep.subr.bf16.mxu0 %v426_v8  ;;  %410 = vmatprep.subr.bf16.mxu1 %v426_v8 }
  0x1b   :  { %385 = vmatpush3.bf16.msra.mxu0 %v426_v8  ;;  %418 = vmatpush3.bf16.msra.mxu1 %v426_v8 }
  0x1c   :  { %386 = vmatprep.subr.bf16.mxu0 %v427_v9  ;;  %411 = vmatprep.subr.bf16.mxu1 %v427_v9 }
  0x1f   :  { %387 = vmatpush3.bf16.msra.mxu0 %v427_v9  ;;  %419 = vmatpush3.bf16.msra.mxu1 %v427_v9 }
  0x22   :  { %389 = vmatmul.mubr.bf16.vlgmr.msra.gmra.mrb[0].mxu0 %v430_v10  ;;  %397 = vmatmul.mubr.bf16.vlgmr.msra.gmra.mrb[0].mxu1 %v431_v11 }
  0x23   :  { %392 = vmatprep.mubr.bf16.mxu0 %v432_v12  ;;  %400 = vmatprep.mubr.bf16.mxu1 %v433_v13 }
  0x2a   :  { %393 = vmatmul.mubr.bf16.gmra.mrb[4].mxu0 %v434_v14  ;;  %401 = vmatmul.mubr.bf16.gmra.mrb[4].mxu1 %v435_v15 }
  0xf5   :  { %v390_v17 = vpop.f32.mrb[0].mxu0  ;;  %v398_v18 = vpop.f32.mrb[0].mxu1 }
  0xf6   :  { %v253_v19 = vadd.f32 %v390_v17, %v355_v16  ;;  %v261_v20 = vadd.f32 %v398_v18, %v355_v16  ;;  %v177_v21 = vpop.f32.mrb[1].mxu0  ;;  %v209_v22 = vpop.f32.mrb[1].mxu1 }
  0xf7   :  { %v251_v23 = vadd.f32 %v355_v16, %v177_v21  ;;  %v259_v24 = vadd.f32 %v355_v16, %v209_v22  ;;  %v391_v25 = vpop.f32.mrb[2].mxu0  ;;  %v399_v26 = vpop.f32.mrb[2].mxu1 }
  0xf8   :  { %269 = vst [vmem:[%s558_s3 + $0x10] sm:$0xff] %v253_v19  ;;  %277 = vst [vmem:[%s558_s3 + $0x50] sm:$0xff] %v261_v20  ;;  %v254_v27 = vadd.f32 %v391_v25, %v355_v16  ;;  %v262_v28 = vadd.f32 %v399_v26, %v355_v16  ;;  %v180_v29 = vpop.f32.mrb[3].mxu0  ;;  %v212_v30 = vpop.f32.mrb[3].mxu1 }
  0xf9   :  { %267 = vst [vmem:[%s558_s3] sm:$0xff] %v251_v23  ;;  %275 = vst [vmem:[%s558_s3 + $0x40] sm:$0xff] %v259_v24  ;;  %v252_v31 = vadd.f32 %v355_v16, %v180_v29  ;;  %v260_v32 = vadd.f32 %v355_v16, %v212_v30 }
  0xfa   :  { %270 = vst [vmem:[%s558_s3 + $0x18] sm:$0xff] %v254_v27  ;;  %278 = vst [vmem:[%s558_s3 + $0x58] sm:$0xff] %v262_v28 }
  0xfb   :  { %268 = vst [vmem:[%s558_s3 + $0x8] sm:$0xff] %v252_v31  ;;  %276 = vst [vmem:[%s558_s3 + $0x48] sm:$0xff] %v260_v32 }
  0xfd   :  { %v394_v33 = vpop.f32.mrb[4].mxu0  ;;  %v402_v34 = vpop.f32.mrb[4].mxu1 }
  0xfe   :  { %v257_v35 = vadd.f32 %v394_v33, %v355_v16  ;;  %v265_v36 = vadd.f32 %v402_v34, %v355_v16  ;;  %v193_v37 = vpop.f32.mrb[5].mxu0  ;;  %v225_v38 = vpop.f32.mrb[5].mxu1 }
  0xff   :  { %v255_v39 = vadd.f32 %v355_v16, %v193_v37  ;;  %v263_v40 = vadd.f32 %v355_v16, %v225_v38  ;;  %v395_v41 = vpop.f32.mrb[6].mxu0  ;;  %v403_v42 = vpop.f32.mrb[6].mxu1 }
 0x100   :  { %273 = vst [vmem:[%s558_s3 + $0x30] sm:$0xff] %v257_v35  ;;  %281 = vst [vmem:[%s558_s3 + $0x70] sm:$0xff] %v265_v36  ;;  %v258_v43 = vadd.f32 %v395_v41, %v355_v16  ;;  %v266_v44 = vadd.f32 %v403_v42, %v355_v16  ;;  %v196_v45 = vpop.f32.mrb[7].mxu0  ;;  %v228_v46 = vpop.f32.mrb[7].mxu1 }
 0x101   :  { %271 = vst [vmem:[%s558_s3 + $0x20] sm:$0xff] %v255_v39  ;;  %279 = vst [vmem:[%s558_s3 + $0x60] sm:$0xff] %v263_v40  ;;  %v256_v47 = vadd.f32 %v355_v16, %v196_v45  ;;  %v264_v48 = vadd.f32 %v355_v16, %v228_v46 }
 0x102   :  { %274 = vst [vmem:[%s558_s3 + $0x38] sm:$0xff] %v258_v43  ;;  %282 = vst [vmem:[%s558_s3 + $0x78] sm:$0xff] %v266_v44 }
 0x103   :  { %272 = vst [vmem:[%s558_s3 + $0x28] sm:$0xff] %v256_v47  ;;  %280 = vst [vmem:[%s558_s3 + $0x68] sm:$0xff] %v264_v48 }

</bundles_post_ra>
